<compile_context>
chip_gen: v5e
topology: v5e:2x2
jax: 0.10.0
libtpu: 0.0.40
codegen_flags: <defaults>
</compile_context>

<pallas_src>
import functools

import jax
import jax.numpy as jnp
from jax import lax
from jax.experimental import pallas as pl
from jax.experimental.pallas import tpu as pltpu


# ---------------------------------------------------------------------------
# Kernels
# ---------------------------------------------------------------------------

def _vbn_resident_kernel(x_ref, gamma_ref, beta_ref, ref_mean_ref, ref_mean_sq_ref,
                         out_ref, mean_ref, mean_sq_ref,
                         *, inv_count, new_coeff, eps):
    """Single-call path: whole x lives in VMEM; stats + normalize in one sweep."""
    x = x_ref[...].astype(jnp.float32)                               # (N, C, L)
    s = jnp.sum(x, axis=2, keepdims=True)                            # (N, C, 1)
    sq = jnp.sum(x * x, axis=2, keepdims=True)                       # (N, C, 1)
    batch_mean = jnp.sum(s, axis=0, keepdims=True) * inv_count       # (1, C, 1)
    batch_mean_sq = jnp.sum(sq, axis=0, keepdims=True) * inv_count   # (1, C, 1)

    old_coeff = 1.0 - new_coeff
    mean = new_coeff * batch_mean + old_coeff * ref_mean_ref[...]
    mean_sq = new_coeff * batch_mean_sq + old_coeff * ref_mean_sq_ref[...]

    inv_std = lax.rsqrt(eps + mean_sq - mean * mean)                 # EUP rsqrt
    scale = gamma_ref[...] * inv_std                                 # (1, C, 1)
    shift = beta_ref[...] - mean * scale

    mean_ref[...] = mean
    mean_sq_ref[...] = mean_sq
    out_ref[...] = (x * scale + shift).astype(out_ref.dtype)


def _vbn_partial_stats_kernel(x_ref, psum_ref, psumsq_ref):
    """Tiled pass 1: per-batch-element partial channel sums / sums of squares.

    Grid = (N, num_L_tiles); the N axis is "parallel" (per-N output blocks, no
    shared scratch) so v7x megacore can shard the stats read across both TCs;
    the L axis is the serial reduction accumulated in the resident out block.
    """
    li = pl.program_id(1)

    @pl.when(li == 0)
    def _init():
        psum_ref[...] = jnp.zeros_like(psum_ref)
        psumsq_ref[...] = jnp.zeros_like(psumsq_ref)

    x = x_ref[...].astype(jnp.float32)                    # (1, C, L_tile)
    psum_ref[...] += jnp.sum(x, axis=2)[:, None, :]       # (1, 1, C)
    psumsq_ref[...] += jnp.sum(x * x, axis=2)[:, None, :]


def _vbn_normalize_kernel(x_ref, scale_ref, shift_ref, out_ref):
    """Tiled pass 2: y = x * scale + shift (f32 math, cast only on the store)."""
    x = x_ref[...].astype(jnp.float32)                    # (1, C, L_tile)
    out_ref[...] = (x * scale_ref[...] + shift_ref[...]).astype(out_ref.dtype)


# ---------------------------------------------------------------------------
# Generation-aware sizing helpers
# ---------------------------------------------------------------------------

_DEFAULT_VMEM_CAP = 64 << 20   # v7x per-TensorCore VMEM; safe lower bound.


def _vmem_capacity_bytes():
    try:
        info = pltpu.get_tpu_info()
        cap = int(getattr(info, "vmem_capacity_bytes", 0))
        if cap > 0:
            return cap
    except Exception:
        pass
    return _DEFAULT_VMEM_CAP


def _padded_dims(c, l, itemsize):
    """VMEM-layout footprint: sublanes pad to 8/16/32 (by dtype), lanes to 128."""
    sublane_pack = (8 * 4) // itemsize
    c_pad = -(-c // sublane_pack) * sublane_pack
    l_pad = -(-l // 128) * 128
    return c_pad, l_pad


def _pick_l_tile(l, c_pad, vmem_cap):
    """Largest multiple-of-128 L tile dividing L whose working set (double-
    buffered in/out blocks + f32 temporaries ~= 6 block-sized f32 buffers)
    stays well under the chip's VMEM capacity."""
    budget = int(0.55 * vmem_cap)
    bytes_per_l = 6 * c_pad * 4
    max_tile = max(128, (budget // bytes_per_l) // 128 * 128)
    if l <= max_tile:
        return l
    t = min(max_tile, (l // 128) * 128)
    while t >= 128:
        if l % t == 0:
            return t
        t -= 128
    return 128


def _vmem_limit(vmem_cap, need_bytes):
    need = int(need_bytes) + (8 << 20)
    return int(min(max(need, 32 << 20), int(0.9 * vmem_cap)))


# ---------------------------------------------------------------------------
# Wrapper (forward pass of VirtualBatchNorm1d)
# ---------------------------------------------------------------------------

def virtual_batch_norm_1d(x, gamma, beta, ref_mean=None, ref_mean_sq=None,
                          eps=1e-5, *, force_tiled=False, l_tile=None,
                          vmem_cap_bytes=None):
    """Returns (out, mean, mean_sq) exactly like VirtualBatchNorm1d.forward."""
    n, c, l = x.shape
    assert gamma.shape == (1, c, 1) and beta.shape == (1, c, 1)

    itemsize = jnp.dtype(x.dtype).itemsize
    vmem_cap = int(vmem_cap_bytes) if vmem_cap_bytes else _vmem_capacity_bytes()
    c_pad, l_pad = _padded_dims(c, l, itemsize)

    # Static virtual-batch coefficient; reference pass <=> coeff == 1.0.
    if ref_mean is None or ref_mean_sq is None:
        new_coeff = 1.0
        ref_mean_f = jnp.zeros((1, c, 1), jnp.float32)
        ref_mean_sq_f = jnp.zeros((1, c, 1), jnp.float32)
    else:
        new_coeff = 1.0 / (n + 1.0)
        ref_mean_f = ref_mean.astype(jnp.float32)
        ref_mean_sq_f = ref_mean_sq.astype(jnp.float32)

    gamma_f = gamma.astype(jnp.float32)
    beta_f = beta.astype(jnp.float32)
    inv_count = 1.0 / float(n * l)

    # ---- Path selection: keep x resident in VMEM when it comfortably fits. ---
    x_vmem = n * c_pad * l_pad * itemsize           # x and out, input dtype
    x_f32_vmem = n * c_pad * l_pad * 4              # f32 intermediates
    resident_need = 2 * x_vmem + 3 * x_f32_vmem + (2 << 20)
    use_resident = (not force_tiled) and resident_need <= int(0.8 * vmem_cap)

    if use_resident:
        kernel = functools.partial(_vbn_resident_kernel, inv_count=inv_count,
                                   new_coeff=float(new_coeff), eps=float(eps))
        out, mean, mean_sq = pl.pallas_call(
            kernel,
            out_shape=(jax.ShapeDtypeStruct((n, c, l), x.dtype),
                       jax.ShapeDtypeStruct((1, c, 1), jnp.float32),
                       jax.ShapeDtypeStruct((1, c, 1), jnp.float32)),
            compiler_params=pltpu.CompilerParams(
                vmem_limit_bytes=_vmem_limit(vmem_cap, resident_need)),
        )(x, gamma_f, beta_f, ref_mean_f, ref_mean_sq_f)
        return out, mean, mean_sq

    # ---- Tiled path (two sweeps over x). --------------------------------------
    # TODO(synk): for C < sublane-pack with x too large for the resident path, a
    # flattened (N*C, L) row layout would avoid sublane padding in these blocks;
    # the resident path already covers the common small-C cases.
    x_t = x
    l_eff = l
    if l % 128 != 0:
        # Pad once so every block is lane-dense; zeros do not perturb the sums
        # because inv_count uses the true L.
        l_eff = -(-l // 128) * 128
        x_t = jnp.pad(x, ((0, 0), (0, 0), (0, l_eff - l)))

    if l_tile is None:
        l_tile = _pick_l_tile(l_eff, c_pad, vmem_cap)
    assert l_eff % l_tile == 0, "l_tile must divide the (padded) length"
    num_l = l_eff // l_tile
    block_f32 = c_pad * l_tile * 4

    # Pass 1: per-N partial stats; N "parallel" (megacore), L "arbitrary"
    # (reduction accumulated directly in the resident output block).
    psum, psumsq = pl.pallas_call(
        _vbn_partial_stats_kernel,
        out_shape=(jax.ShapeDtypeStruct((n, 1, c), jnp.float32),
                   jax.ShapeDtypeStruct((n, 1, c), jnp.float32)),
        grid=(n, num_l),
        in_specs=[pl.BlockSpec((1, c, l_tile), lambda ni, li: (ni, 0, li))],
        out_specs=(pl.BlockSpec((1, 1, c), lambda ni, li: (ni, 0, 0)),
                   pl.BlockSpec((1, 1, c), lambda ni, li: (ni, 0, 0))),
        compiler_params=pltpu.CompilerParams(
            dimension_semantics=("parallel", "arbitrary"),
            vmem_limit_bytes=_vmem_limit(vmem_cap, 3 * block_f32)),
    )(x_t)

    # Tiny XLA epilogue: combine the (N,1,C) partials with the reference stats
    # and fold gamma/beta/rsqrt into (1, C, 1) f32 scale/shift for pass 2.
    batch_mean = jnp.sum(psum, axis=0).reshape(1, c, 1) * inv_count
    batch_mean_sq = jnp.sum(psumsq, axis=0).reshape(1, c, 1) * inv_count
    old_coeff = 1.0 - new_coeff
    mean = new_coeff * batch_mean + old_coeff * ref_mean_f
    mean_sq = new_coeff * batch_mean_sq + old_coeff * ref_mean_sq_f
    inv_std = lax.rsqrt(eps + mean_sq - mean * mean)
    scale = gamma_f * inv_std
    shift = beta_f - mean * scale

    # Pass 2: elementwise normalize; both axes "parallel" for megacore sharding.
    par_spec = pl.BlockSpec((1, c, 1), lambda ni, li: (0, 0, 0))
    out = pl.pallas_call(
        _vbn_normalize_kernel,
        out_shape=jax.ShapeDtypeStruct(x_t.shape, x.dtype),
        grid=(n, num_l),
        in_specs=[pl.BlockSpec((1, c, l_tile), lambda ni, li: (ni, 0, li)),
                  par_spec, par_spec],
        out_specs=pl.BlockSpec((1, c, l_tile), lambda ni, li: (ni, 0, li)),
        compiler_params=pltpu.CompilerParams(
            dimension_semantics=("parallel", "parallel"),
            vmem_limit_bytes=_vmem_limit(vmem_cap, 5 * block_f32)),
    )(x_t, scale, shift)

    if l_eff != l:
        out = out[:, :, :l]
    return out, mean, mean_sq


# ---------------------------------------------------------------------------
# Pure-JAX reference mirroring the PyTorch module (verification only)
# ---------------------------------------------------------------------------

def _reference_jax(x, gamma, beta, ref_mean, ref_mean_sq, eps=1e-5):
    n = x.shape[0]
    mean = jnp.mean(jnp.mean(x, axis=2, keepdims=True), axis=0, keepdims=True)
    mean_sq = jnp.mean(jnp.mean(x * x, axis=2, keepdims=True), axis=0, keepdims=True)
    if ref_mean is not None and ref_mean_sq is not None:
        new_c = 1.0 / (n + 1.0)
        mean = new_c * mean + (1.0 - new_c) * ref_mean
        mean_sq = new_c * mean_sq + (1.0 - new_c) * ref_mean_sq
    std = jnp.sqrt(eps + mean_sq - mean ** 2)
    out = (x - mean) / std * gamma + beta
    return out, mean, mean_sq


def _check_case(key, n, c, l, dtype=jnp.float32, force_tiled=False, l_tile=None,
                out_atol=1e-5, out_rtol=1e-5, stat_atol=1e-5):
    k_gamma, k_xref, k_x = jax.random.split(key, 3)
    # Deterministic init matching torch.normal(mean=1.0, std=0.02) / zeros.
    gamma = (1.0 + 0.02 * jax.random.normal(k_gamma, (1, c, 1))).astype(jnp.float32)
    beta = jnp.zeros((1, c, 1), dtype=jnp.float32)
    x_ref_batch = jax.random.normal(k_xref, (n, c, l)).astype(dtype)
    x_train = jax.random.normal(k_x, (n, c, l)).astype(dtype)

    # Pass 1: reference batch (ref stats are None). Pass 2: train batch.
    out_r, ref_m, ref_ms = virtual_batch_norm_1d(
        x_ref_batch, gamma, beta, None, None,
        force_tiled=force_tiled, l_tile=l_tile)
    out_t, mean_t, mean_sq_t = virtual_batch_norm_1d(
        x_train, gamma, beta, ref_m, ref_ms,
        force_tiled=force_tiled, l_tile=l_tile)
    jax.block_until_ready((out_r, ref_m, ref_ms, out_t, mean_t, mean_sq_t))

    xr = x_ref_batch.astype(jnp.float32)
    xt = x_train.astype(jnp.float32)
    exp_out_r, exp_m, exp_ms = _reference_jax(xr, gamma, beta, None, None)
    exp_out_t, exp_mt, exp_mst = _reference_jax(xt, gamma, beta, exp_m, exp_ms)

    assert out_r.dtype == dtype and out_t.dtype == dtype
    assert jnp.allclose(out_r.astype(jnp.float32), exp_out_r, atol=out_atol, rtol=out_rtol)
    assert jnp.allclose(out_t.astype(jnp.float32), exp_out_t, atol=out_atol, rtol=out_rtol)
    for got, exp in ((ref_m, exp_m), (ref_ms, exp_ms),
                     (mean_t, exp_mt), (mean_sq_t, exp_mst)):
        assert jnp.allclose(got, exp, atol=stat_atol, rtol=1e-4)


if __name__ == "__main__":
    key = jax.random.PRNGKey(0)
    k1, k2, k3, k4 = jax.random.split(key, 4)

    # 1) Small module-like shape (batch=2, num_features=4, length=16):
    #    resident single-kernel path (x stays in VMEM, one read + one write).
    _check_case(k1, n=2, c=4, l=16)

    # 2) Forced tiled path: multi-L-tile grid, per-N partial-stats outputs and
    #    the elementwise normalize pass.
    _check_case(k2, n=2, c=8, l=512, force_tiled=True, l_tile=128)

    # 3) Forced tiled path with L not a multiple of 128 (wrapper-side padding).
    _check_case(k3, n=2, c=8, l=200, force_tiled=True, l_tile=128)

    # 4) bf16 input through the resident path (f32 math, cast only on store).
    _check_case(k4, n=2, c=16, l=128, dtype=jnp.bfloat16,
                out_atol=3e-2, out_rtol=3e-2, stat_atol=1e-2)

    print("KERNEL_OK")
</pallas_src>

<mosaic_0001>
module attributes {stable_mosaic.version = 11 : i64} {
  func.func @_vbn_resident_kernel(%arg0: memref<2x4x16xf32, #tpu.memory_space<vmem>>, %arg1: memref<1x4x1xf32, #tpu.memory_space<vmem>>, %arg2: memref<1x4x1xf32, #tpu.memory_space<vmem>>, %arg3: memref<1x4x1xf32, #tpu.memory_space<vmem>>, %arg4: memref<1x4x1xf32, #tpu.memory_space<vmem>>, %arg5: memref<2x4x16xf32, #tpu.memory_space<vmem>>, %arg6: memref<1x4x1xf32, #tpu.memory_space<vmem>>, %arg7: memref<1x4x1xf32, #tpu.memory_space<vmem>>) attributes {dimension_semantics = [], scalar_prefetch = 0 : i64, scratch_operands = 0 : i64, tpu.core_type = #tpu.core_type<tc>} {
    %c0 = arith.constant 0 : index
    %c0_0 = arith.constant 0 : index
    %c0_1 = arith.constant 0 : index
    %0 = vector.load %arg0[%c0, %c0_0, %c0_1] : memref<2x4x16xf32, #tpu.memory_space<vmem>>, vector<2x4x16xf32>
    %cst = arith.constant dense<0.000000e+00> : vector<2x4xf32>
    %1 = vector.multi_reduction <add>, %0, %cst [2] : vector<2x4x16xf32> to vector<2x4xf32>
    %2 = vector.shape_cast %1 : vector<2x4xf32> to vector<2x4x1xf32>
    %3 = arith.mulf %0, %0 : vector<2x4x16xf32>
    %cst_2 = arith.constant dense<0.000000e+00> : vector<2x4xf32>
    %4 = vector.multi_reduction <add>, %3, %cst_2 [2] : vector<2x4x16xf32> to vector<2x4xf32>
    %5 = vector.shape_cast %4 : vector<2x4xf32> to vector<2x4x1xf32>
    %cst_3 = arith.constant dense<0.000000e+00> : vector<4x1xf32>
    %6 = vector.multi_reduction <add>, %2, %cst_3 [0] : vector<2x4x1xf32> to vector<4x1xf32>
    %7 = vector.shape_cast %6 : vector<4x1xf32> to vector<1x4x1xf32>
    %cst_4 = arith.constant 3.125000e-02 : f32
    %8 = vector.broadcast %cst_4 : f32 to vector<1x4x1xf32>
    %9 = arith.mulf %7, %8 : vector<1x4x1xf32>
    %cst_5 = arith.constant dense<0.000000e+00> : vector<4x1xf32>
    %10 = vector.multi_reduction <add>, %5, %cst_5 [0] : vector<2x4x1xf32> to vector<4x1xf32>
    %11 = vector.shape_cast %10 : vector<4x1xf32> to vector<1x4x1xf32>
    %cst_6 = arith.constant 3.125000e-02 : f32
    %12 = vector.broadcast %cst_6 : f32 to vector<1x4x1xf32>
    %13 = arith.mulf %11, %12 : vector<1x4x1xf32>
    %cst_7 = arith.constant 1.000000e+00 : f32
    %14 = vector.broadcast %cst_7 : f32 to vector<1x4x1xf32>
    %15 = arith.mulf %14, %9 : vector<1x4x1xf32>
    %c0_8 = arith.constant 0 : index
    %c0_9 = arith.constant 0 : index
    %c0_10 = arith.constant 0 : index
    %16 = vector.load %arg3[%c0_8, %c0_9, %c0_10] : memref<1x4x1xf32, #tpu.memory_space<vmem>>, vector<1x4x1xf32>
    %cst_11 = arith.constant 0.000000e+00 : f32
    %17 = vector.broadcast %cst_11 : f32 to vector<1x4x1xf32>
    %18 = arith.mulf %17, %16 : vector<1x4x1xf32>
    %19 = arith.addf %15, %18 : vector<1x4x1xf32>
    %cst_12 = arith.constant 1.000000e+00 : f32
    %20 = vector.broadcast %cst_12 : f32 to vector<1x4x1xf32>
    %21 = arith.mulf %20, %13 : vector<1x4x1xf32>
    %c0_13 = arith.constant 0 : index
    %c0_14 = arith.constant 0 : index
    %c0_15 = arith.constant 0 : index
    %22 = vector.load %arg4[%c0_13, %c0_14, %c0_15] : memref<1x4x1xf32, #tpu.memory_space<vmem>>, vector<1x4x1xf32>
    %cst_16 = arith.constant 0.000000e+00 : f32
    %23 = vector.broadcast %cst_16 : f32 to vector<1x4x1xf32>
    %24 = arith.mulf %23, %22 : vector<1x4x1xf32>
    %25 = arith.addf %21, %24 : vector<1x4x1xf32>
    %cst_17 = arith.constant 9.99999974E-6 : f32
    %26 = vector.broadcast %cst_17 : f32 to vector<1x4x1xf32>
    %27 = arith.addf %26, %25 : vector<1x4x1xf32>
    %28 = arith.mulf %19, %19 : vector<1x4x1xf32>
    %29 = arith.subf %27, %28 : vector<1x4x1xf32>
    %30 = math.rsqrt %29 : vector<1x4x1xf32>
    %c0_18 = arith.constant 0 : index
    %c0_19 = arith.constant 0 : index
    %c0_20 = arith.constant 0 : index
    %31 = vector.load %arg1[%c0_18, %c0_19, %c0_20] : memref<1x4x1xf32, #tpu.memory_space<vmem>>, vector<1x4x1xf32>
    %32 = arith.mulf %31, %30 : vector<1x4x1xf32>
    %c0_21 = arith.constant 0 : index
    %c0_22 = arith.constant 0 : index
    %c0_23 = arith.constant 0 : index
    %33 = vector.load %arg2[%c0_21, %c0_22, %c0_23] : memref<1x4x1xf32, #tpu.memory_space<vmem>>, vector<1x4x1xf32>
    %34 = arith.mulf %19, %32 : vector<1x4x1xf32>
    %35 = arith.subf %33, %34 : vector<1x4x1xf32>
    %c0_24 = arith.constant 0 : index
    %c0_25 = arith.constant 0 : index
    %c0_26 = arith.constant 0 : index
    %36 = vector.load %arg6[%c0_24, %c0_25, %c0_26] : memref<1x4x1xf32, #tpu.memory_space<vmem>>, vector<1x4x1xf32>
    tpu.vector_store %arg6[%c0_24, %c0_25, %c0_26], %19 {strides = array<i32>} : memref<1x4x1xf32, #tpu.memory_space<vmem>>, vector<1x4x1xf32>,
    %c0_27 = arith.constant 0 : index
    %c0_28 = arith.constant 0 : index
    %c0_29 = arith.constant 0 : index
    %37 = vector.load %arg7[%c0_27, %c0_28, %c0_29] : memref<1x4x1xf32, #tpu.memory_space<vmem>>, vector<1x4x1xf32>
    tpu.vector_store %arg7[%c0_27, %c0_28, %c0_29], %25 {strides = array<i32>} : memref<1x4x1xf32, #tpu.memory_space<vmem>>, vector<1x4x1xf32>,
    %38 = vector.broadcast %32 : vector<1x4x1xf32> to vector<2x4x16xf32>
    %39 = arith.mulf %0, %38 : vector<2x4x16xf32>
    %40 = vector.broadcast %35 : vector<1x4x1xf32> to vector<2x4x16xf32>
    %41 = arith.addf %39, %40 : vector<2x4x16xf32>
    %c0_30 = arith.constant 0 : index
    %c0_31 = arith.constant 0 : index
    %c0_32 = arith.constant 0 : index
    %42 = vector.load %arg5[%c0_30, %c0_31, %c0_32] : memref<2x4x16xf32, #tpu.memory_space<vmem>>, vector<2x4x16xf32>
    tpu.vector_store %arg5[%c0_30, %c0_31, %c0_32], %41 {strides = array<i32>} : memref<2x4x16xf32, #tpu.memory_space<vmem>>, vector<2x4x16xf32>,
    return
  }
}

</mosaic_0001>

<bundles_post_ra>
// kernel: tpu_custom_call.1
= control target key start
LH: loop header
LB: loop body
LE: loop exit
PB: predicated region body
PF: predicated region fallthrough
CT: control target
= control target key end

     0   :  { %vm26_vm0 = vcmask 125952   ;;  %s236_s0 = inlined_call_operand.vmem [shape: f32[2,4,16], index: 0, kind: input, shape index: {}]   ;;  %s237_s1 = inlined_call_operand.vmem [shape: f32[1,4,1], index: 1, kind: input, shape index: {}]   ;;  %s238_s2 = inlined_call_operand.vmem [shape: f32[1,4,1], index: 2, kind: input, shape index: {}]   ;;  %s239_s3 = inlined_call_operand.vmem [shape: f32[1,4,1], index: 3, kind: input, shape index: {}]   ;;  %s240_s4 = inlined_call_operand.vmem [shape: f32[1,4,1], index: 4, kind: input, shape index: {}]   ;;  %s241_s5 = inlined_call_operand.hbm [shape: f32[2,4,16], index: 5, kind: output, shape index: {0}]   ;;  %s242_s6 = inlined_call_operand.vmem [shape: f32[1,4,1], index: 6, kind: output, shape index: {1}]   ;;  %s243_s7 = inlined_call_operand.vmem [shape: f32[1,4,1], index: 7, kind: output, shape index: {2}]  }
   0x1   :  { %v200_v0 = vld [vmem:[%s236_s0] sm:$0xf] }
   0x2   :  { %v27_v1 = vsel %vm26_vm0, %v200_v0, 0.0  ;;  %v33_v2 = vmul.f32 %v200_v0, %v200_v0 }
   0x3   :  { %13 = vsyncpa [#allocation3], 0  ;;  %28 = vadd.xlane.f32.xlu0 %v27_v1  ;;  %v25_v3 = vld [vmem:[%s236_s0 + $0x4] sm:$0xf]  ;;  %v153_v8 = vmov 0   ;;  %vm41_vm1 = vcmask 1043456  }
   0x4   :  { %v35_v4 = vsel %vm26_vm0, %v33_v2, 0.0  ;;  %v34_v5 = vmul.f32 %v25_v3, %v25_v3  ;;  %v30_v6 = vsel %vm26_vm0, %v25_v3, 0.0  ;;  %123 = vset.pattern.permute.xlu2 %v153_v8  ;;  %124 = vset.pattern.permute.xlu0 %v153_v8  ;;  %v50_v11 = vld [vmem:[%s239_s3] sm:$0xf]  ;;  %vm74_vm2 = vcmask 3072   ;;  %s154_s12 = smov [#allocation2]  }
   0x5   :  { %36 = vadd.xlane.f32.xlu1 %v35_v4  ;;  %v53_v15 = vld [vmem:[%s240_s4] sm:$0xf]  ;;  %v51_v16 = vmul.f32 0.0, %v50_v11  ;;  %s97_s13 = sshll.u32 %s154_s12, 4  ;;  %s99_s16 = sshll.u32 %s241_s5, 4  ;;  %s98_s13 = int_to_ptr.vmem [resolvable:$true] %s97_s13  ;;  %s100_s16 = int_to_ptr.hbm [resolvable:$true] %s99_s16 }
   0x6   :  { %v38_v7 = vsel %vm26_vm0, %v34_v5, 0.0  ;;  %v54_v22 = vmul.f32 0.0, %v53_v15  ;;  %v69_v36 = vld [vmem:[%s237_s1] sm:$0xf]  ;;  %s155_s1 = smov 64  }
   0x7   :  { %v71_v40 = vld [vmem:[%s238_s2] sm:$0xf]  ;;  %s156_s2 = smov 4  }
   0xb   :  { %31 = vadd.xlane.f32.xlu0 %v30_v6 }
   0xd   :  { %39 = vadd.xlane.f32.xlu1 %v38_v7 }
  0x76   :  { %v29_v9 = vpop.xlane.xlu0 %28 }
  0x77   :  { %v42_v13 = vsel %vm41_vm1, %v29_v9, 0.0 }
  0x78   :  { %v37_v10 = vpop.xlane.xlu1 %36 }
  0x79   :  { %v46_v19 = vsel %vm41_vm1, %v37_v10, 0.0 }
  0x7e   :  { %v32_v12 = vpop.xlane.xlu0 %31 }
  0x7f   :  { %v43_v14 = vsel %vm41_vm1, %v32_v12, 0.0 }
  0x80   :  { %v44_v17 = vadd.f32 %v43_v14, %v42_v13  ;;  %v40_v18 = vpop.xlane.xlu1 %39 }
  0x81   :  { %v47_v20 = vsel %vm41_vm1, %v40_v18, 0.0 }
  0x82   :  { %v45_v21 = vmul.f32 0.03125, %v44_v17  ;;  %v48_v23 = vadd.f32 %v47_v20, %v46_v19 }
  0x84   :  { %v52_v24 = vadd.f32 %v51_v16, %v45_v21  ;;  %v49_v25 = vmul.f32 0.03125, %v48_v23 }
  0x86   :  { %v55_v26 = vadd.f32 %v54_v22, %v49_v25  ;;  %75 = vst.msk [vmem:[%s242_s6] sm:$0xf] %vm74_vm2, %v52_v24  ;;  %v57_v27 = vmul.f32 %v52_v24, %v52_v24 }
  0x88   :  { %v56_v28 = vadd.f32 1e-05, %v55_v26  ;;  %76 = vst.msk [vmem:[%s243_s7] sm:$0xf] %vm74_vm2, %v55_v26 }
  0x8a   :  { %v58_v29 = vsub.f32 %v56_v28, %v57_v27 }
  0x8c   :  { %125 = vrsqrt.f32 %v58_v29  ;;  %vm65_vm4 = vweird.f32 %v58_v29 }
  0x92   :  { %v126_v30 = vpop.eup %125 }
  0x93   :  { %v60_v31 = vmul.f32 %v126_v30, %v58_v29  ;;  %vm66_vm3 = vweird.f32 %v126_v30 }
  0x94   :  { %vm67_vm5 = vmor %vm65_vm4, %vm66_vm3 }
  0x95   :  { %v61_v32 = vmul.f32 %v126_v30, %v60_v31 }
  0x97   :  { %v62_v33 = vmul.f32 0.5, %v61_v32 }
  0x99   :  { %v63_v34 = vsub.f32 1.5, %v62_v33 }
  0x9b   :  { %v64_v35 = vmul.f32 %v126_v30, %v63_v34 }
  0x9d   :  { %v68_v37 = vsel %vm67_vm5, %v126_v30, %v64_v35 }
  0x9e   :  { %v70_v38 = vmul.f32 %v69_v36, %v68_v37 }
  0xa0   :  { %79 = vperm.xlu2 %123, %v70_v38   ;;  %v72_v39 = vmul.f32 %v70_v38, %v52_v24 }
  0xa2   :  { %v73_v41 = vsub.f32 %v71_v40, %v72_v39 }
  0xa8   :  { %86 = vperm.xlu2 %123, %v73_v41  }
  0xfa   :  { %v80_v42 = vpop.permute.xlu2 %79 }
  0xfb   :  { %v82_v43 = vmul.f32 %v80_v42, %v200_v0  ;;  %v83_v44 = vmul.f32 %v80_v42, %v25_v3 }
 0x102   :  { %v87_v45 = vpop.permute.xlu2 %86 }
 0x103   :  { %v89_v46 = vadd.f32 %v87_v45, %v82_v43  ;;  %v90_v47 = vadd.f32 %v87_v45, %v83_v44 }
 0x105   :  { %91 = vst.msk [vmem:[#allocation2] sm:$0xf] %vm26_vm0, %v89_v46 }
 0x106   :  { %92 = vst.msk [vmem:[#allocation2 + $0x4] sm:$0xf] %vm26_vm0, %v90_v47 }
 0x107   :  { %105 = dma.vmem_to_hbm [thread:$0]  %s98_s13, 128, %s100_s16, [#allocation3], %s155_s1, %s155_s1, %s156_s2  }
 0x108   :  { %151 = dma.done.wait [#allocation3], 128  }
 0x109   :  { %152 = vsyncadd [#allocation3], 4294967168 }
 0x10a   :  { %118 = vsyncpa [#allocation3], 1 }

</bundles_post_ra>
